<compile_context>
chip_gen: v6e
topology: v6e:2x2x1
jax: 0.10.0
libtpu: 0.0.40
codegen_flags: <defaults>
</compile_context>

<pallas_src>
import jax
import jax.numpy as jnp
from jax.experimental import pallas as pl
from jax.experimental.pallas import tpu as pltpu

# ----------------------------- config (small shapes) -----------------------------
B = 2                     # batch
NUM_POINTS = 16           # args.num_points
MINIMAL_OBS_DIM = 10
GOAL_DIM = 6
STATE_DIM = MINIMAL_OBS_DIM + GOAL_DIM        # states_fc input = cat(states, goal) = 16
POINTNET_OUT = 32         # args.pointnet_output_dim
ACTION_DIM = 4
NUM_LAYERS = 4            # MLPBase default
WIDTH = 64                # MLPBase width (== 2*POINTNET_OUT so layers stack)
MAX_ACTION = 1.0

C_IN = 6                  # xyz + normals per point
H1, H2, H3 = 32, 64, 64   # per-stream pointnet conv widths

FLAT_DIM = MINIMAL_OBS_DIM + GOAL_DIM + 4 * NUM_POINTS * 3   # 208
BN = B * NUM_POINTS                                          # 32
ACT_ROWS = ((BN + B + 7) // 8) * 8                           # 40 (sublane aligned)
ACT_COLS = 16                                                # pts use 12, states/goal use 16

# ---- weight-slab row offsets (all starts sublane (8) aligned) ----
R_W1 = 0        # block-diag conv1  [12, 64]   (stored padded to 16 rows, zero pad)
R_W2 = 16       # block-diag conv2  [64, 128]
R_W3 = 80       # block-diag conv3  [128, 128]
R_WFP = 208     # folded fuse-fc @ points_fc [128, 32]
R_WS = 336      # states_fc         [16, 32]
R_WM0 = 352     # MLP layer 0       [64, 64]
R_WM1 = 416     # MLP layer 1       [64, 64]
R_WM2 = 480     # MLP layer 2       [64, 64]
R_WL = 544      # final linear      [64, 4] (lane-padded to 128)
W_ROWS = 608
B_ROWS = 16     # bias slab rows (9 used)


# ----------------------------------- kernel --------------------------------------
def pointnet_mlp_kernel(act_ref, w_ref, b_ref, out_ref):
    f32 = jnp.float32

    # ---- two-stream PointNet as block-diagonal per-point MLP (single 2D matmuls) ----
    # act rows 0:BN = per-point features [obj xyz|obj nrm|tgt xyz|tgt nrm, zero pad to 16]
    pts = act_ref[0:BN, :]                                             # [BN, 16]
    h = jnp.dot(pts, w_ref[R_W1:R_W1 + 16, 0:64],
                preferred_element_type=f32)                            # [BN, 64]
    h = jnp.maximum(h + b_ref[0:1, 0:64], 0.0)
    h = jnp.dot(h, w_ref[R_W2:R_W2 + 64, :],
                preferred_element_type=f32)                            # [BN, 128]
    h = jnp.maximum(h + b_ref[1:2, :], 0.0)
    h = jnp.dot(h, w_ref[R_W3:R_W3 + 128, :],
                preferred_element_type=f32) + b_ref[2:3, :]            # [BN, 128]

    # global max-pool over points; lanes 0:64 = obj stream, 64:128 = tgt stream
    feat = jnp.max(h.reshape(B, NUM_POINTS, 2 * H3), axis=1)           # [B, 128]

    # ---- pointnet fuse fc folded with points_fc (no nonlinearity between) ----
    pfeat = jnp.dot(feat, w_ref[R_WFP:R_WFP + 128, 0:POINTNET_OUT],
                    preferred_element_type=f32) + b_ref[3:4, 0:POINTNET_OUT]
    pfeat = jnp.maximum(pfeat, 0.0)                                    # ReLU(points_fc(...))
    # F.normalize(dim=-1): x / max(||x||, 1e-12)  ==  x * rsqrt(max(sumsq, 1e-24))
    pfeat = pfeat * jax.lax.rsqrt(
        jnp.maximum(jnp.sum(pfeat * pfeat, axis=-1, keepdims=True), 1e-24))

    # ---- states_fc(cat(states, goal)) -> ReLU -> F.normalize ----
    sg = act_ref[BN:BN + B, :]                                         # [B, 16]
    sfeat = jnp.maximum(
        jnp.dot(sg, w_ref[R_WS:R_WS + STATE_DIM, 0:POINTNET_OUT],
                preferred_element_type=f32) + b_ref[4:5, 0:POINTNET_OUT], 0.0)
    sfeat = sfeat * jax.lax.rsqrt(
        jnp.maximum(jnp.sum(sfeat * sfeat, axis=-1, keepdims=True), 1e-24))

    # ---- MLPBase: first layer as split dot over ctx = [sfeat | pfeat] ----
    hm = (jnp.dot(sfeat, w_ref[R_WM0:R_WM0 + POINTNET_OUT, 0:WIDTH],
                  preferred_element_type=f32)
          + jnp.dot(pfeat, w_ref[R_WM0 + POINTNET_OUT:R_WM0 + WIDTH, 0:WIDTH],
                    preferred_element_type=f32)
          + b_ref[5:6, 0:WIDTH])
    hm = jnp.maximum(hm, 0.0)
    hm = jnp.maximum(
        jnp.dot(hm, w_ref[R_WM1:R_WM1 + WIDTH, 0:WIDTH],
                preferred_element_type=f32) + b_ref[6:7, 0:WIDTH], 0.0)
    hm = jnp.maximum(
        jnp.dot(hm, w_ref[R_WM2:R_WM2 + WIDTH, 0:WIDTH],
                preferred_element_type=f32) + b_ref[7:8, 0:WIDTH], 0.0)

    # final linear (lane-padded to 128 for an unmasked store) + tanh epilogue
    a = jnp.dot(hm, w_ref[R_WL:R_WL + WIDTH, :],
                preferred_element_type=f32) + b_ref[8:9, :]            # [B, 128]
    out_ref[...] = MAX_ACTION * jnp.tanh(a)


# ---------------------------------- params & packing ------------------------------
def init_params(key):
    ks = jax.random.split(key, 16)
    s = 0.1
    return {
        "wc1": jax.random.normal(ks[0], (2, C_IN, H1), jnp.float32) * s,
        "bc1": jax.random.normal(ks[1], (2, H1), jnp.float32) * s,
        "wc2": jax.random.normal(ks[2], (2, H1, H2), jnp.float32) * s,
        "bc2": jax.random.normal(ks[3], (2, H2), jnp.float32) * s,
        "wc3": jax.random.normal(ks[4], (2, H2, H3), jnp.float32) * s,
        "bc3": jax.random.normal(ks[5], (2, H3), jnp.float32) * s,
        "wf": jax.random.normal(ks[6], (2 * H3, POINTNET_OUT), jnp.float32) * s,
        "bf": jax.random.normal(ks[7], (POINTNET_OUT,), jnp.float32) * s,
        "wp": jax.random.normal(ks[8], (POINTNET_OUT, POINTNET_OUT), jnp.float32) * s,
        "bp": jax.random.normal(ks[9], (POINTNET_OUT,), jnp.float32) * s,
        "ws": jax.random.normal(ks[10], (STATE_DIM, POINTNET_OUT), jnp.float32) * s,
        "bs": jax.random.normal(ks[11], (POINTNET_OUT,), jnp.float32) * s,
        "wm": jax.random.normal(ks[12], (NUM_LAYERS - 1, WIDTH, WIDTH), jnp.float32) * s,
        "bm": jax.random.normal(ks[13], (NUM_LAYERS - 1, WIDTH), jnp.float32) * s,
        "wl": jax.random.normal(ks[14], (WIDTH, ACTION_DIM), jnp.float32) * s,
        "bl": jax.random.normal(ks[15], (ACTION_DIM,), jnp.float32) * s,
    }


def pack_params(p):
    """Pack all weights/biases into two lane-dense f32 slabs (done once, host side)."""
    def bd(a, b):  # block-diagonal of two matrices
        ra, ca = a.shape
        rb, cb = b.shape
        m = jnp.zeros((ra + rb, ca + cb), jnp.float32)
        return m.at[:ra, :ca].set(a).at[ra:, ca:].set(b)

    W1 = bd(p["wc1"][0], p["wc1"][1])                        # [12, 64]
    W2 = bd(p["wc2"][0], p["wc2"][1])                        # [64, 128]
    W3 = bd(p["wc3"][0], p["wc3"][1])                        # [128, 128]
    b1 = jnp.concatenate([p["bc1"][0], p["bc1"][1]])         # [64]
    b2 = jnp.concatenate([p["bc2"][0], p["bc2"][1]])         # [128]
    b3 = jnp.concatenate([p["bc3"][0], p["bc3"][1]])         # [128]
    WFP = p["wf"] @ p["wp"]                                  # fold fuse fc -> points_fc
    bFP = p["bf"] @ p["wp"] + p["bp"]

    w = jnp.zeros((W_ROWS, 128), jnp.float32)
    w = w.at[R_W1:R_W1 + 12, 0:64].set(W1)
    w = w.at[R_W2:R_W2 + 64, 0:128].set(W2)
    w = w.at[R_W3:R_W3 + 128, 0:128].set(W3)
    w = w.at[R_WFP:R_WFP + 128, 0:POINTNET_OUT].set(WFP)
    w = w.at[R_WS:R_WS + STATE_DIM, 0:POINTNET_OUT].set(p["ws"])
    w = w.at[R_WM0:R_WM0 + WIDTH, 0:WIDTH].set(p["wm"][0])
    w = w.at[R_WM1:R_WM1 + WIDTH, 0:WIDTH].set(p["wm"][1])
    w = w.at[R_WM2:R_WM2 + WIDTH, 0:WIDTH].set(p["wm"][2])
    w = w.at[R_WL:R_WL + WIDTH, 0:ACTION_DIM].set(p["wl"])

    b = jnp.zeros((B_ROWS, 128), jnp.float32)
    b = b.at[0, 0:64].set(b1)
    b = b.at[1, 0:128].set(b2)
    b = b.at[2, 0:128].set(b3)
    b = b.at[3, 0:POINTNET_OUT].set(bFP)
    b = b.at[4, 0:POINTNET_OUT].set(p["bs"])
    b = b.at[5, 0:WIDTH].set(p["bm"][0])
    b = b.at[6, 0:WIDTH].set(p["bm"][1])
    b = b.at[7, 0:WIDTH].set(p["bm"][2])
    b = b.at[8, 0:ACTION_DIM].set(p["bl"])
    return w, b


# ---------------------------------- wrapper ---------------------------------------
def flat2dict(x):
    """Glue equivalent of args.flat2dict: slice the flat obs vector."""
    idx = 0
    out = {}
    for name, n in [("minimal_obs", MINIMAL_OBS_DIM),
                    ("desired_goal", GOAL_DIM),
                    ("object_points", NUM_POINTS * 3),
                    ("target_points", NUM_POINTS * 3),
                    ("object_normals", NUM_POINTS * 3),
                    ("target_normals", NUM_POINTS * 3)]:
        out[name] = x[:, idx:idx + n]
        idx += n
    return out


def pointnet_mlp_forward(x, w_slab, b_slab):
    d = flat2dict(x)
    obj_pts = d["object_points"].reshape(B, NUM_POINTS, 3)
    tgt_pts = d["target_points"].reshape(B, NUM_POINTS, 3)
    obj_nrm = d["object_normals"].reshape(B, NUM_POINTS, 3)
    tgt_nrm = d["target_normals"].reshape(B, NUM_POINTS, 3)
    # per-point feature = [obj xyz | obj nrm | tgt xyz | tgt nrm]  (matches block-diag W1)
    pts12 = jnp.concatenate([obj_pts, obj_nrm, tgt_pts, tgt_nrm], axis=-1)  # [B, N, 12]
    pts12 = pts12.reshape(BN, 12)
    sg = jnp.concatenate([d["minimal_obs"], d["desired_goal"]], axis=-1)    # [B, 16]

    # single activation slab: rows 0:BN = points, rows BN:BN+B = states||goal
    act = jnp.zeros((ACT_ROWS, ACT_COLS), jnp.float32)
    act = act.at[0:BN, 0:12].set(pts12)
    act = act.at[BN:BN + B, 0:STATE_DIM].set(sg)

    vmem = pl.BlockSpec(memory_space=pltpu.MemorySpace.VMEM)
    out = pl.pallas_call(
        pointnet_mlp_kernel,
        out_shape=jax.ShapeDtypeStruct((B, 128), jnp.float32),   # lane-dense output slab
        in_specs=[vmem, vmem, vmem],
        out_specs=vmem,
    )(act, w_slab, b_slab)
    return out[:, :ACTION_DIM]


# ------------------------------ pure-JAX reference ---------------------------------
def reference_forward(x, p):
    d = flat2dict(x)
    obj = jnp.concatenate([d["object_points"].reshape(B, NUM_POINTS, 3),
                           d["object_normals"].reshape(B, NUM_POINTS, 3)], axis=-1)
    tgt = jnp.concatenate([d["target_points"].reshape(B, NUM_POINTS, 3),
                           d["target_normals"].reshape(B, NUM_POINTS, 3)], axis=-1)

    def stream(pts, s):
        h = jax.nn.relu(pts @ p["wc1"][s] + p["bc1"][s])
        h = jax.nn.relu(h @ p["wc2"][s] + p["bc2"][s])
        h = h @ p["wc3"][s] + p["bc3"][s]
        return jnp.max(h, axis=1)

    feat = jnp.concatenate([stream(obj, 0), stream(tgt, 1)], axis=-1)   # [B, 128]
    pfeat = feat @ p["wf"] + p["bf"]
    pfeat = jax.nn.relu(pfeat @ p["wp"] + p["bp"])
    pfeat = pfeat / jnp.maximum(
        jnp.linalg.norm(pfeat, axis=-1, keepdims=True), 1e-12)
    sg = jnp.concatenate([d["minimal_obs"], d["desired_goal"]], axis=-1)
    sfeat = jax.nn.relu(sg @ p["ws"] + p["bs"])
    sfeat = sfeat / jnp.maximum(
        jnp.linalg.norm(sfeat, axis=-1, keepdims=True), 1e-12)
    h = jnp.concatenate([sfeat, pfeat], axis=-1)
    for i in range(NUM_LAYERS - 1):
        h = jax.nn.relu(h @ p["wm"][i] + p["bm"][i])
    a = h @ p["wl"] + p["bl"]
    return MAX_ACTION * jnp.tanh(a)


# ------------------------------------ main -----------------------------------------
if __name__ == "__main__":
    key = jax.random.PRNGKey(0)
    k_x, k_p = jax.random.split(key)
    x = jax.random.normal(k_x, (B, FLAT_DIM), jnp.float32)
    params = init_params(k_p)
    w_slab, b_slab = pack_params(params)   # one-time host-side packing

    action = jax.jit(pointnet_mlp_forward)(x, w_slab, b_slab)
    action = jax.block_until_ready(action)

    ref = reference_forward(x, params)

    assert action.shape == (B, ACTION_DIM)
    assert bool(jnp.all(jnp.isfinite(action)))
    assert bool(jnp.all(jnp.abs(action) <= MAX_ACTION))
    assert bool(jnp.allclose(action, ref, atol=1e-4, rtol=1e-4))
    print("KERNEL_OK")
</pallas_src>

<mosaic_0001>
module attributes {stable_mosaic.version = 11 : i64} {
  func.func @pointnet_mlp_kernel(%arg0: memref<40x16xf32, #tpu.memory_space<vmem>>, %arg1: memref<608x128xf32, #tpu.memory_space<vmem>>, %arg2: memref<16x128xf32, #tpu.memory_space<vmem>>, %arg3: memref<2x128xf32, #tpu.memory_space<vmem>>) attributes {dimension_semantics = [], scalar_prefetch = 0 : i64, scratch_operands = 0 : i64, tpu.core_type = #tpu.core_type<tc>} {
    %c0 = arith.constant 0 : index
    %c0_0 = arith.constant 0 : index
    %0 = vector.load %arg0[%c0, %c0_0] : memref<40x16xf32, #tpu.memory_space<vmem>>, vector<32x16xf32>
    %c0_1 = arith.constant 0 : index
    %c0_2 = arith.constant 0 : index
    %1 = vector.load %arg1[%c0_1, %c0_2] : memref<608x128xf32, #tpu.memory_space<vmem>>, vector<16x64xf32>
    %cst = arith.constant dense<0.000000e+00> : vector<32x64xf32>
    %2 = tpu.matmul %0, %1, %cst {dimension_numbers = #tpu.dot_dimension_numbers<[1], [0], [0], [1], [0, 0, 1, 1], [], []>} : vector<32x16xf32>, vector<16x64xf32>, vector<32x64xf32> -> vector<32x64xf32>
    %c0_3 = arith.constant 0 : index
    %c0_4 = arith.constant 0 : index
    %3 = vector.load %arg2[%c0_3, %c0_4] : memref<16x128xf32, #tpu.memory_space<vmem>>, vector<1x64xf32>
    %4 = vector.broadcast %3 : vector<1x64xf32> to vector<32x64xf32>
    %5 = arith.addf %2, %4 : vector<32x64xf32>
    %cst_5 = arith.constant 0.000000e+00 : f32
    %6 = vector.broadcast %cst_5 : f32 to vector<32x64xf32>
    %7 = arith.maximumf %5, %6 : vector<32x64xf32>
    %c16 = arith.constant 16 : index
    %c0_6 = arith.constant 0 : index
    %8 = vector.load %arg1[%c16, %c0_6] : memref<608x128xf32, #tpu.memory_space<vmem>>, vector<64x128xf32>
    %cst_7 = arith.constant dense<0.000000e+00> : vector<32x128xf32>
    %9 = tpu.matmul %7, %8, %cst_7 {dimension_numbers = #tpu.dot_dimension_numbers<[1], [0], [0], [1], [0, 0, 1, 1], [], []>} : vector<32x64xf32>, vector<64x128xf32>, vector<32x128xf32> -> vector<32x128xf32>
    %c1 = arith.constant 1 : index
    %c0_8 = arith.constant 0 : index
    %10 = vector.load %arg2[%c1, %c0_8] : memref<16x128xf32, #tpu.memory_space<vmem>>, vector<1x128xf32>
    %11 = vector.broadcast %10 : vector<1x128xf32> to vector<32x128xf32>
    %12 = arith.addf %9, %11 : vector<32x128xf32>
    %cst_9 = arith.constant 0.000000e+00 : f32
    %13 = vector.broadcast %cst_9 : f32 to vector<32x128xf32>
    %14 = arith.maximumf %12, %13 : vector<32x128xf32>
    %c80 = arith.constant 80 : index
    %c0_10 = arith.constant 0 : index
    %15 = vector.load %arg1[%c80, %c0_10] : memref<608x128xf32, #tpu.memory_space<vmem>>, vector<128x128xf32>
    %cst_11 = arith.constant dense<0.000000e+00> : vector<32x128xf32>
    %16 = tpu.matmul %14, %15, %cst_11 {dimension_numbers = #tpu.dot_dimension_numbers<[1], [0], [0], [1], [0, 0, 1, 1], [], []>} : vector<32x128xf32>, vector<128x128xf32>, vector<32x128xf32> -> vector<32x128xf32>
    %c2 = arith.constant 2 : index
    %c0_12 = arith.constant 0 : index
    %17 = vector.load %arg2[%c2, %c0_12] : memref<16x128xf32, #tpu.memory_space<vmem>>, vector<1x128xf32>
    %18 = vector.broadcast %17 : vector<1x128xf32> to vector<32x128xf32>
    %19 = arith.addf %16, %18 : vector<32x128xf32>
    %20 = vector.shape_cast %19 : vector<32x128xf32> to vector<2x16x128xf32>
    %cst_13 = arith.constant dense<0xFF800000> : vector<2x128xf32>
    %21 = vector.multi_reduction <maximumf>, %20, %cst_13 [1] : vector<2x16x128xf32> to vector<2x128xf32>
    %c208 = arith.constant 208 : index
    %c0_14 = arith.constant 0 : index
    %22 = vector.load %arg1[%c208, %c0_14] : memref<608x128xf32, #tpu.memory_space<vmem>>, vector<128x32xf32>
    %cst_15 = arith.constant dense<0.000000e+00> : vector<2x32xf32>
    %23 = tpu.matmul %21, %22, %cst_15 {dimension_numbers = #tpu.dot_dimension_numbers<[1], [0], [0], [1], [0, 0, 1, 1], [], []>} : vector<2x128xf32>, vector<128x32xf32>, vector<2x32xf32> -> vector<2x32xf32>
    %c3 = arith.constant 3 : index
    %c0_16 = arith.constant 0 : index
    %24 = vector.load %arg2[%c3, %c0_16] : memref<16x128xf32, #tpu.memory_space<vmem>>, vector<1x32xf32>
    %25 = vector.broadcast %24 : vector<1x32xf32> to vector<2x32xf32>
    %26 = arith.addf %23, %25 : vector<2x32xf32>
    %cst_17 = arith.constant 0.000000e+00 : f32
    %27 = vector.broadcast %cst_17 : f32 to vector<2x32xf32>
    %28 = arith.maximumf %26, %27 : vector<2x32xf32>
    %29 = arith.mulf %28, %28 : vector<2x32xf32>
    %cst_18 = arith.constant dense<0.000000e+00> : vector<2xf32>
    %30 = vector.multi_reduction <add>, %29, %cst_18 [1] : vector<2x32xf32> to vector<2xf32>
    %31 = vector.shape_cast %30 : vector<2xf32> to vector<2x1xf32>
    %cst_19 = arith.constant 1.000000e-24 : f32
    %32 = vector.broadcast %cst_19 : f32 to vector<2x1xf32>
    %33 = arith.maximumf %31, %32 : vector<2x1xf32>
    %34 = math.rsqrt %33 : vector<2x1xf32>
    %35 = vector.broadcast %34 : vector<2x1xf32> to vector<2x32xf32>
    %36 = arith.mulf %28, %35 : vector<2x32xf32>
    %c32 = arith.constant 32 : index
    %c0_20 = arith.constant 0 : index
    %37 = vector.load %arg0[%c32, %c0_20] : memref<40x16xf32, #tpu.memory_space<vmem>>, vector<2x16xf32>
    %c336 = arith.constant 336 : index
    %c0_21 = arith.constant 0 : index
    %38 = vector.load %arg1[%c336, %c0_21] : memref<608x128xf32, #tpu.memory_space<vmem>>, vector<16x32xf32>
    %cst_22 = arith.constant dense<0.000000e+00> : vector<2x32xf32>
    %39 = tpu.matmul %37, %38, %cst_22 {dimension_numbers = #tpu.dot_dimension_numbers<[1], [0], [0], [1], [0, 0, 1, 1], [], []>} : vector<2x16xf32>, vector<16x32xf32>, vector<2x32xf32> -> vector<2x32xf32>
    %c4 = arith.constant 4 : index
    %c0_23 = arith.constant 0 : index
    %40 = vector.load %arg2[%c4, %c0_23] : memref<16x128xf32, #tpu.memory_space<vmem>>, vector<1x32xf32>
    %41 = vector.broadcast %40 : vector<1x32xf32> to vector<2x32xf32>
    %42 = arith.addf %39, %41 : vector<2x32xf32>
    %cst_24 = arith.constant 0.000000e+00 : f32
    %43 = vector.broadcast %cst_24 : f32 to vector<2x32xf32>
    %44 = arith.maximumf %42, %43 : vector<2x32xf32>
    %45 = arith.mulf %44, %44 : vector<2x32xf32>
    %cst_25 = arith.constant dense<0.000000e+00> : vector<2xf32>
    %46 = vector.multi_reduction <add>, %45, %cst_25 [1] : vector<2x32xf32> to vector<2xf32>
    %47 = vector.shape_cast %46 : vector<2xf32> to vector<2x1xf32>
    %cst_26 = arith.constant 1.000000e-24 : f32
    %48 = vector.broadcast %cst_26 : f32 to vector<2x1xf32>
    %49 = arith.maximumf %47, %48 : vector<2x1xf32>
    %50 = math.rsqrt %49 : vector<2x1xf32>
    %51 = vector.broadcast %50 : vector<2x1xf32> to vector<2x32xf32>
    %52 = arith.mulf %44, %51 : vector<2x32xf32>
    %c352 = arith.constant 352 : index
    %c0_27 = arith.constant 0 : index
    %53 = vector.load %arg1[%c352, %c0_27] : memref<608x128xf32, #tpu.memory_space<vmem>>, vector<32x64xf32>
    %cst_28 = arith.constant dense<0.000000e+00> : vector<2x64xf32>
    %54 = tpu.matmul %52, %53, %cst_28 {dimension_numbers = #tpu.dot_dimension_numbers<[1], [0], [0], [1], [0, 0, 1, 1], [], []>} : vector<2x32xf32>, vector<32x64xf32>, vector<2x64xf32> -> vector<2x64xf32>
    %c384 = arith.constant 384 : index
    %c0_29 = arith.constant 0 : index
    %55 = vector.load %arg1[%c384, %c0_29] : memref<608x128xf32, #tpu.memory_space<vmem>>, vector<32x64xf32>
    %cst_30 = arith.constant dense<0.000000e+00> : vector<2x64xf32>
    %56 = tpu.matmul %36, %55, %cst_30 {dimension_numbers = #tpu.dot_dimension_numbers<[1], [0], [0], [1], [0, 0, 1, 1], [], []>} : vector<2x32xf32>, vector<32x64xf32>, vector<2x64xf32> -> vector<2x64xf32>
    %57 = arith.addf %54, %56 : vector<2x64xf32>
    %c5 = arith.constant 5 : index
    %c0_31 = arith.constant 0 : index
    %58 = vector.load %arg2[%c5, %c0_31] : memref<16x128xf32, #tpu.memory_space<vmem>>, vector<1x64xf32>
    %59 = vector.broadcast %58 : vector<1x64xf32> to vector<2x64xf32>
    %60 = arith.addf %57, %59 : vector<2x64xf32>
    %cst_32 = arith.constant 0.000000e+00 : f32
    %61 = vector.broadcast %cst_32 : f32 to vector<2x64xf32>
    %62 = arith.maximumf %60, %61 : vector<2x64xf32>
    %c416 = arith.constant 416 : index
    %c0_33 = arith.constant 0 : index
    %63 = vector.load %arg1[%c416, %c0_33] : memref<608x128xf32, #tpu.memory_space<vmem>>, vector<64x64xf32>
    %cst_34 = arith.constant dense<0.000000e+00> : vector<2x64xf32>
    %64 = tpu.matmul %62, %63, %cst_34 {dimension_numbers = #tpu.dot_dimension_numbers<[1], [0], [0], [1], [0, 0, 1, 1], [], []>} : vector<2x64xf32>, vector<64x64xf32>, vector<2x64xf32> -> vector<2x64xf32>
    %c6 = arith.constant 6 : index
    %c0_35 = arith.constant 0 : index
    %65 = vector.load %arg2[%c6, %c0_35] : memref<16x128xf32, #tpu.memory_space<vmem>>, vector<1x64xf32>
    %66 = vector.broadcast %65 : vector<1x64xf32> to vector<2x64xf32>
    %67 = arith.addf %64, %66 : vector<2x64xf32>
    %cst_36 = arith.constant 0.000000e+00 : f32
    %68 = vector.broadcast %cst_36 : f32 to vector<2x64xf32>
    %69 = arith.maximumf %67, %68 : vector<2x64xf32>
    %c480 = arith.constant 480 : index
    %c0_37 = arith.constant 0 : index
    %70 = vector.load %arg1[%c480, %c0_37] : memref<608x128xf32, #tpu.memory_space<vmem>>, vector<64x64xf32>
    %cst_38 = arith.constant dense<0.000000e+00> : vector<2x64xf32>
    %71 = tpu.matmul %69, %70, %cst_38 {dimension_numbers = #tpu.dot_dimension_numbers<[1], [0], [0], [1], [0, 0, 1, 1], [], []>} : vector<2x64xf32>, vector<64x64xf32>, vector<2x64xf32> -> vector<2x64xf32>
    %c7 = arith.constant 7 : index
    %c0_39 = arith.constant 0 : index
    %72 = vector.load %arg2[%c7, %c0_39] : memref<16x128xf32, #tpu.memory_space<vmem>>, vector<1x64xf32>
    %73 = vector.broadcast %72 : vector<1x64xf32> to vector<2x64xf32>
    %74 = arith.addf %71, %73 : vector<2x64xf32>
    %cst_40 = arith.constant 0.000000e+00 : f32
    %75 = vector.broadcast %cst_40 : f32 to vector<2x64xf32>
    %76 = arith.maximumf %74, %75 : vector<2x64xf32>
    %c544 = arith.constant 544 : index
    %c0_41 = arith.constant 0 : index
    %77 = vector.load %arg1[%c544, %c0_41] : memref<608x128xf32, #tpu.memory_space<vmem>>, vector<64x128xf32>
    %cst_42 = arith.constant dense<0.000000e+00> : vector<2x128xf32>
    %78 = tpu.matmul %76, %77, %cst_42 {dimension_numbers = #tpu.dot_dimension_numbers<[1], [0], [0], [1], [0, 0, 1, 1], [], []>} : vector<2x64xf32>, vector<64x128xf32>, vector<2x128xf32> -> vector<2x128xf32>
    %c8 = arith.constant 8 : index
    %c0_43 = arith.constant 0 : index
    %79 = vector.load %arg2[%c8, %c0_43] : memref<16x128xf32, #tpu.memory_space<vmem>>, vector<1x128xf32>
    %80 = vector.broadcast %79 : vector<1x128xf32> to vector<2x128xf32>
    %81 = arith.addf %78, %80 : vector<2x128xf32>
    %82 = math.tanh %81 : vector<2x128xf32>
    %cst_44 = arith.constant 1.000000e+00 : f32
    %83 = vector.broadcast %cst_44 : f32 to vector<2x128xf32>
    %84 = arith.mulf %83, %82 : vector<2x128xf32>
    %c0_45 = arith.constant 0 : index
    %c0_46 = arith.constant 0 : index
    %85 = vector.load %arg3[%c0_45, %c0_46] : memref<2x128xf32, #tpu.memory_space<vmem>>, vector<2x128xf32>
    tpu.vector_store %arg3[%c0_45, %c0_46], %84 {strides = array<i32>} : memref<2x128xf32, #tpu.memory_space<vmem>>, vector<2x128xf32>,
    return
  }
}

</mosaic_0001>

<bundles_post_ra>
// kernel: pointnet_mlp_forward.1
= control target key start
LH: loop header
LB: loop body
LE: loop exit
PB: predicated region body
PF: predicated region fallthrough
CT: control target
= control target key end

     0   :  { %8 = vsyncpa [#allocation3], 0  ;;  %s1525_s0 = inlined_call_operand.vmem [shape: f32[40,16], index: 0, kind: input, shape index: {}]   ;;  %s1526_s1 = inlined_call_operand.hbm [shape: f32[608,128], index: 1, kind: input, shape index: {}]   ;;  %s1527_s2 = inlined_call_operand.vmem [shape: f32[16,128], index: 2, kind: input, shape index: {}]   ;;  %s1528_s3 = inlined_call_operand.hbm [shape: f32[2,128], index: 3, kind: output, shape index: {}]  }
   0x1   :  { %9 = vsyncpa [#allocation4], 0  ;;  %s1375_s12 = smov [#allocation2]  }
   0x2   :  { %s17_s13 = sshll.u32 %s1375_s12, 4  ;;  %s18_s13 = int_to_ptr.vmem [resolvable:$true] %s17_s13 }
   0x3   :  { %s1339_s14 = scalar_lea.vmem %s18_s13, 9728  ;;  %p1344_p1 = scmp.lt.s32.totalorder %s18_s13, %s18_s13 }
   0x4   :  { %p1340_p0 = scmp.ne.s32.totalorder %s18_s13, %s1339_s14  ;;  %p1345_p2 = scmp.lt.s32.totalorder %s1339_s14, %s1339_s14 }
   0x6   :  { %p1346_p3 = por %p1345_p2, %p1344_p1 }
   0x8   :  { %p1347_p4 = pnand %p1346_p3, %p1340_p0 }
   0xa   :  { %1350 = shalt.err (!%p1347_p4)
}
   0xb   :  { %s1376_s15 = smov 128   ;;  %s1377_s16 = smov 8  }
   0xc   :  { %23 = dma.hbm_to_vmem [thread:$0]  %s1526_s1, 9728, %s18_s13, [#allocation3], %s1376_s15, %s1376_s15, %s1377_s16  }
   0xd   :  { %1371 = dma.done.wait [#allocation3], 9728  }
   0xe   :  { %1372 = vsyncadd [#allocation3], 4294957568  ;;  %vm40_vm0 = vcmask 130048   ;;  %v34_v0 = vld [vmem:[#allocation2 + $0x8] sm:$0xff]  ;;  %v33_v1 = vld [vmem:[#allocation2] sm:$0xff]  ;;  %vm155_vm1 = vcmask 523264  }
   0xf   :  { %v29_v2 = vld [vmem:[%s1525_s0] sm:$0xff]  ;;  %1128 = vmatprep.subr.mxu0 %v34_v0  ;;  %v30_v3 = vld [vmem:[%s1525_s0 + $0x8] sm:$0xff]  ;;  %v31_v6 = vld [vmem:[%s1525_s0 + $0x10] sm:$0xff]  ;;  %v1378_v44 = vmov 0.0   ;;  %vm1379_vm2 = vmmov 0   ;;  %vm400_vm3 = vcmask 1041409  }
  0x10   :  { %1132 = vmatprep.mubr.msk.f32.mxu0 %vm40_vm0, %v29_v2  ;;  %1129 = vmatpush3.msra.mxu0 %v34_v0  ;;  %v149_v4 = vld [vmem:[#allocation2 + $0x48] sm:$0xff]  ;;  %v148_v5 = vld [vmem:[#allocation2 + $0x40] sm:$0xff]  ;;  %v147_v7 = vld [vmem:[#allocation2 + $0x38] sm:$0xff]  ;;  %vm475_vm4 = vcmask 254976   ;;  %vm579_vm5 = vcmask 261120   ;;  %s1380_s18 = smov [#allocation5]  }
  0x11   :  { %1130 = vmatprep.subr.mxu0 %v33_v1  ;;  %1138 = vmatprep.subr.mxu1 %v149_v4  ;;  %v32_v8 = vld [vmem:[%s1525_s0 + $0x18] sm:$0xff]  ;;  %v146_v9 = vld [vmem:[#allocation2 + $0x30] sm:$0xff]  ;;  %v145_v10 = vld [vmem:[#allocation2 + $0x28] sm:$0xff]  ;;  %s1001_s19 = sshll.u32 %s1380_s18, 4  ;;  %s1002_s19 = int_to_ptr.vmem [resolvable:$true] %s1001_s19 }
  0x12   :  { %1131 = vmatpush3.msra.mxu0 %v33_v1  ;;  %1139 = vmatpush3.msra.mxu1 %v149_v4  ;;  %v144_v11 = vld [vmem:[#allocation2 + $0x20] sm:$0xff]  ;;  %v143_v12 = vld [vmem:[#allocation2 + $0x18] sm:$0xff]  ;;  %v142_v13 = vld [vmem:[#allocation2 + $0x10] sm:$0xff]  ;;  %s1351_s20 = scalar_lea.vmem %s1002_s19, 32  ;;  %p1356_p6 = scmp.lt.s32.totalorder %s1002_s19, %s1002_s19 }
  0x13   :  { %1133 = vmatmul.mubr.msk.f32.vlgmr.msra.gmra.mxu0 %vm40_vm0, %v30_v3  ;;  %1140 = vmatprep.subr.mxu1 %v148_v5  ;;  %v272_v14 = vld [vmem:[#allocation2 + $0xc8] sm:$0xff]  ;;  %v271_v15 = vld [vmem:[#allocation2 + $0xc0] sm:$0xff]  ;;  %v270_v16 = vld [vmem:[#allocation2 + $0xb8] sm:$0xff]  ;;  %p1352_p5 = scmp.ne.s32.totalorder %s1002_s19, %s1351_s20  ;;  %p1357_p7 = scmp.lt.s32.totalorder %s1351_s20, %s1351_s20 }
  0x14   :  { %1135 = vmatprep.mubr.msk.f32.mxu0 %vm40_vm0, %v31_v6  ;;  %1141 = vmatpush3.msra.mxu1 %v148_v5  ;;  %v269_v17 = vld [vmem:[#allocation2 + $0xb0] sm:$0xff]  ;;  %v268_v18 = vld [vmem:[#allocation2 + $0xa8] sm:$0xff]  ;;  %v267_v19 = vld [vmem:[#allocation2 + $0xa0] sm:$0xff] }
  0x15   :  { %1142 = vmatprep.subr.mxu1 %v147_v7  ;;  %1160 = vmatprep.subr.mxu0 %v272_v14  ;;  %v266_v20 = vld [vmem:[#allocation2 + $0x98] sm:$0xff]  ;;  %v265_v21 = vld [vmem:[#allocation2 + $0x90] sm:$0xff]  ;;  %v264_v22 = vld [vmem:[#allocation2 + $0x88] sm:$0xff]  ;;  %p1358_p8 = por %p1357_p7, %p1356_p6 }
  0x16   :  { %1143 = vmatpush3.msra.mxu1 %v147_v7  ;;  %1161 = vmatpush3.msra.mxu0 %v272_v14  ;;  %v263_v23 = vld [vmem:[#allocation2 + $0x80] sm:$0xff]  ;;  %v262_v24 = vld [vmem:[#allocation2 + $0x78] sm:$0xff]  ;;  %v261_v25 = vld [vmem:[#allocation2 + $0x70] sm:$0xff] }
  0x17   :  { %1136 = vmatmul.mubr.msk.f32.gmra.mxu0 %vm40_vm0, %v32_v8  ;;  %1144 = vmatprep.subr.mxu1 %v146_v9  ;;  %v1010_v26 = vld [vmem:[%s1527_s2] ss:$0 sm:$0xff]  ;;  %v260_v39 = vld [vmem:[#allocation2 + $0x68] sm:$0xff]  ;;  %v258_v41 = vld [vmem:[#allocation2 + $0x58] sm:$0xff]  ;;  %p1359_p9 = pnand %p1358_p8, %p1352_p5 }
  0x18   :  { %1145 = vmatpush3.msra.mxu1 %v146_v9  ;;  %1162 = vmatprep.subr.mxu0 %v271_v15  ;;  %v259_v40 = vld [vmem:[#allocation2 + $0x60] sm:$0xff]  ;;  %v257_v42 = vld [vmem:[#allocation2 + $0x50] sm:$0xff]  ;;  %v392_v43 = vld [vmem:[#allocation2 + $0x148] sm:$0xff] }
  0x19   :  { %1146 = vmatprep.subr.mxu1 %v145_v10  ;;  %1163 = vmatpush3.msra.mxu0 %v271_v15  ;;  %v391_v45 = vld [vmem:[#allocation2 + $0x140] sm:$0xff]  ;;  %v390_v46 = vld [vmem:[#allocation2 + $0x138] sm:$0xff]  ;;  %v389_v47 = vld [vmem:[#allocation2 + $0x130] sm:$0xff] }
  0x1a   :  { %1147 = vmatpush3.msra.mxu1 %v145_v10  ;;  %1164 = vmatprep.subr.mxu0 %v270_v16  ;;  %v1015_v48 = vld [vmem:[%s1527_s2 + $0x1] ss:$0 sm:$0xff]  ;;  %v388_v61 = vld [vmem:[#allocation2 + $0x128] sm:$0xff]  ;;  %v386_v63 = vld [vmem:[#allocation2 + $0x118] sm:$0xff] }
  0x1b   :  { %1148 = vmatprep.subr.mxu1 %v144_v11  ;;  %1165 = vmatpush3.msra.mxu0 %v270_v16  ;;  %v387_v62 = vld [vmem:[#allocation2 + $0x120] sm:$0xff]  ;;  %v385_v0 = vld [vmem:[#allocation2 + $0x110] sm:$0xff]  ;;  %v384_v1 = vld [vmem:[#allocation2 + $0x108] sm:$0xff] }
  0x1c   :  { %1149 = vmatpush3.msra.mxu1 %v144_v11  ;;  %1166 = vmatprep.subr.mxu0 %v269_v17  ;;  %v383_v2 = vld [vmem:[#allocation2 + $0x100] sm:$0xff]  ;;  %v382_v3 = vld [vmem:[#allocation2 + $0xf8] sm:$0xff]  ;;  %v381_v4 = vld [vmem:[#allocation2 + $0xf0] sm:$0xff] }
  0x1d   :  { %1150 = vmatprep.subr.mxu1 %v143_v12  ;;  %1167 = vmatpush3.msra.mxu0 %v269_v17  ;;  %v380_v5 = vld [vmem:[#allocation2 + $0xe8] sm:$0xff]  ;;  %v379_v6 = vld [vmem:[#allocation2 + $0xe0] sm:$0xff]  ;;  %v378_v7 = vld [vmem:[#allocation2 + $0xd8] sm:$0xff] }
  0x1e   :  { %1151 = vmatpush3.msra.mxu1 %v143_v12  ;;  %1168 = vmatprep.subr.mxu0 %v268_v18  ;;  %v377_v8 = vld [vmem:[#allocation2 + $0xd0] sm:$0xff]  ;;  %v1020_v10 = vld [vmem:[%s1527_s2 + $0x2] ss:$0 sm:$0xff] }
  0x1f   :  { %1152 = vmatprep.subr.mxu1 %v142_v13  ;;  %1169 = vmatpush3.msra.mxu0 %v268_v18 }
  0x20   :  { %1153 = vmatpush3.msra.mxu1 %v142_v13  ;;  %1170 = vmatprep.subr.mxu0 %v267_v19 }
  0x21   :  { %1171 = vmatpush3.msra.mxu0 %v267_v19  ;;  %1198 = vmatprep.subr.mxu1 %v1378_v44 }
  0x22   :  { %1172 = vmatprep.subr.mxu0 %v266_v20 }
  0x23   :  { %1173 = vmatpush3.msra.mxu0 %v266_v20 }
  0x24   :  { %1174 = vmatprep.subr.mxu0 %v265_v21 }
  0x25   :  { %1175 = vmatpush3.msra.mxu0 %v265_v21 }
  0x26   :  { %1176 = vmatprep.subr.mxu0 %v264_v22 }
  0x27   :  { %1177 = vmatpush3.msra.mxu0 %v264_v22 }
  0x28   :  { %1178 = vmatprep.subr.mxu0 %v263_v23 }
  0x29   :  { %1179 = vmatpush3.msra.mxu0 %v263_v23 }
  0x2a   :  { %1180 = vmatprep.subr.mxu0 %v262_v24 }
  0x2b   :  { %1181 = vmatpush3.msra.mxu0 %v262_v24 }
  0x2c   :  { %1182 = vmatprep.subr.mxu0 %v261_v25 }
  0x2d   :  { %1183 = vmatpush3.msra.mxu0 %v261_v25 }
  0x2e   :  { %1184 = vmatprep.subr.mxu0 %v260_v39 }
  0x2f   :  { %1185 = vmatpush3.msra.mxu0 %v260_v39 }
  0x30   :  { %1186 = vmatprep.subr.mxu0 %v259_v40 }
  0x31   :  { %1187 = vmatpush3.msra.mxu0 %v259_v40  ;;  %v1022_v40 = vld [vmem:[%s1527_s2 + $0x4] ss:$0 sm:$0xff] }
  0x32   :  { %1188 = vmatprep.subr.mxu0 %v258_v41 }
  0x33   :  { %1189 = vmatpush3.msra.mxu0 %v258_v41 }
  0x34   :  { %1190 = vmatprep.subr.mxu0 %v257_v42 }
  0x35   :  { %1191 = vmatpush3.msra.mxu0 %v257_v42 }
  0x36   :  { %1240 = vmatprep.subr.mxu0 %v1378_v44 }
  0xd3   :  { %v1134_v27 = vpop.f32.mrf.mxu0 }
  0xd4   :  { %v125_v28 = vadd.f32 %v1134_v27, %v1010_v26 }
  0xd5   :  { %v119_v29 = vpop.f32.mrf.mxu0 }
  0xd6   :  { %v120_v30 = vadd.f32 %v1010_v26, %v119_v29  ;;  %v139_v33 = vmax.f32 %v125_v28, 0.0 }
  0xd7   :  { %v1137_v31 = vpop.f32.mrf.mxu0 }
  0xd8   :  { %v138_v32 = vmax.f32 %v120_v30, 0.0  ;;  %v135_v34 = vadd.f32 %v1137_v31, %v1010_v26 }
  0xd9   :  { %v129_v35 = vpop.f32.mrf.mxu0 }
  0xda   :  { %v130_v36 = vadd.f32 %v1010_v26, %v129_v35  ;;  %1154 = vmatprep.mubr.msk.f32.mxu1 %vm155_vm1, %v138_v32  ;;  %v141_v38 = vmax.f32 %v135_v34, 0.0  ;;  %v484_v32 = vld [vmem:[#allocation2 + $0x158] sm:$0xff]  ;;  %v483_v34 = vld [vmem:[#allocation2 + $0x150] sm:$0xff]  ;;  %v482_v35 = vld [vmem:[%s1525_s0 + $0x20] sm:$0x3] }
  0xdb   :  { %1155 = vmatmul.mubr.msk.f32.vlgmr.msra.gmra.mxu1 %vm155_vm1, %v139_v33 }
  0xdc   :  { %v140_v37 = vmax.f32 %v130_v36, 0.0  ;;  %1199 = vmatpush3.msra.mxu1 %v392_v43  ;;  %v1021_v36 = vld [vmem:[%s1527_s2 + $0x3] ss:$0 sm:$0xff] }
  0xdd   :  { %1200 = vmatprep.subr.mxu1 %v1378_v44 }
  0xde   :  { %1157 = vmatprep.mubr.msk.f32.mxu1 %vm155_vm1, %v140_v37  ;;  %1201 = vmatpush3.msra.mxu1 %v391_v45 }
  0xdf   :  { %1158 = vmatmul.mubr.msk.f32.gmra.mxu1 %vm155_vm1, %v141_v38  ;;  %1202 = vmatprep.subr.mxu1 %v1378_v44 }
  0xe0   :  { %1203 = vmatpush3.msra.mxu1 %v390_v46  ;;  %1230 = vmatprep.mubr.msk.f32.mxu1 %vm1379_vm2, %v1378_v44 }
  0xe1   :  { %1204 = vmatprep.subr.mxu1 %v1378_v44 }
  0xe2   :  { %1205 = vmatpush3.msra.mxu1 %v389_v47 }
  0xe3   :  { %1206 = vmatprep.subr.mxu1 %v1378_v44 }
  0xe4   :  { %1207 = vmatpush3.msra.mxu1 %v388_v61 }
  0xe5   :  { %1208 = vmatprep.subr.mxu1 %v1378_v44 }
  0xe6   :  { %1209 = vmatpush3.msra.mxu1 %v387_v62 }
  0xe7   :  { %1210 = vmatprep.subr.mxu1 %v1378_v44 }
  0xe8   :  { %1211 = vmatpush3.msra.mxu1 %v386_v63 }
  0xe9   :  { %1212 = vmatprep.subr.mxu1 %v1378_v44 }
  0xea   :  { %1213 = vmatpush3.msra.mxu1 %v385_v0 }
  0xeb   :  { %1214 = vmatprep.subr.mxu1 %v1378_v44 }
  0xec   :  { %1215 = vmatpush3.msra.mxu1 %v384_v1  ;;  %v740_v1 = vld [vmem:[#allocation2 + $0x1d8] sm:$0xff] }
  0xed   :  { %1216 = vmatprep.subr.mxu1 %v1378_v44 }
  0xee   :  { %1217 = vmatpush3.msra.mxu1 %v383_v2  ;;  %v739_v2 = vld [vmem:[#allocation2 + $0x1d0] sm:$0xff] }
  0xef   :  { %1218 = vmatprep.subr.mxu1 %v1378_v44 }
  0xf0   :  { %1219 = vmatpush3.msra.mxu1 %v382_v3 }
  0xf1   :  { %1220 = vmatprep.subr.mxu1 %v1378_v44 }
  0xf2   :  { %1221 = vmatpush3.msra.mxu1 %v381_v4 }
  0xf3   :  { %1222 = vmatprep.subr.mxu1 %v1378_v44 }
  0xf4   :  { %1223 = vmatpush3.msra.mxu1 %v380_v5  ;;  %v738_v5 = vld [vmem:[#allocation2 + $0x1c8] sm:$0xff] }
  0xf5   :  { %1224 = vmatprep.subr.mxu1 %v1378_v44 }
  0xf6   :  { %1225 = vmatpush3.msra.mxu1 %v379_v6  ;;  %v737_v6 = vld [vmem:[#allocation2 + $0x1c0] sm:$0xff] }
  0xf7   :  { %1226 = vmatprep.subr.mxu1 %v1378_v44 }
  0xf8   :  { %1227 = vmatpush3.msra.mxu1 %v378_v7  ;;  %v736_v7 = vld [vmem:[#allocation2 + $0x1b8] sm:$0xff] }
  0xf9   :  { %1228 = vmatprep.subr.mxu1 %v1378_v44 }
  0xfa   :  { %1229 = vmatpush3.msra.mxu1 %v377_v8  ;;  %v735_v8 = vld [vmem:[#allocation2 + $0x1b0] sm:$0xff] }
  0xfb   :  { %1233 = vmatprep.subr.mxu1 %v1378_v44 }
 0x19b   :  { %v1156_v49 = vpop.f32.mrf.mxu1 }
 0x19c   :  { %v240_v50 = vadd.f32 %v1156_v49, %v1015_v48 }
 0x19d   :  { %v234_v51 = vpop.f32.mrf.mxu1 }
 0x19e   :  { %v235_v52 = vadd.f32 %v1015_v48, %v234_v51  ;;  %v254_v55 = vmax.f32 %v240_v50, 0.0  ;;  %v578_v51 = vld [vmem:[#allocation2 + $0x198] sm:$0xff] }
 0x19f   :  { %v1159_v53 = vpop.f32.mrf.mxu1 }
 0x1a0   :  { %v253_v54 = vmax.f32 %v235_v52, 0.0  ;;  %v250_v56 = vadd.f32 %v1159_v53, %v1015_v48  ;;  %v577_v52 = vld [vmem:[#allocation2 + $0x190] sm:$0xff]  ;;  %v576_v53 = vld [vmem:[#allocation2 + $0x188] sm:$0xff] }
 0x1a1   :  { %v244_v57 = vpop.f32.mrf.mxu1 }
 0x1a2   :  { %v245_v58 = vadd.f32 %v1015_v48, %v244_v57  ;;  %1192 = vmatprep.mubr.f32.mxu0 %v253_v54  ;;  %v256_v60 = vmax.f32 %v250_v56, 0.0  ;;  %v574_v54 = vld [vmem:[#allocation2 + $0x178] sm:$0xff]  ;;  %v573_v56 = vld [vmem:[#allocation2 + $0x170] sm:$0xff]  ;;  %v572_v57 = vld [vmem:[#allocation2 + $0x168] sm:$0xff] }
 0x1a3   :  { %1193 = vmatmul.mubr.f32.vlgmr.msra.gmra.mxu0 %v254_v55  ;;  %v575_v55 = vld [vmem:[#allocation2 + $0x180] sm:$0xff] }
 0x1a4   :  { %v255_v59 = vmax.f32 %v245_v58, 0.0  ;;  %1241 = vmatpush3.msra.mxu0 %v578_v51  ;;  %v571_v58 = vld [vmem:[#allocation2 + $0x160] sm:$0xff] }
 0x1a5   :  { %1242 = vmatprep.subr.mxu0 %v1378_v44 }
 0x1a6   :  { %1195 = vmatprep.mubr.f32.mxu0 %v255_v59  ;;  %1243 = vmatpush3.msra.mxu0 %v577_v52 }
 0x1a7   :  { %1196 = vmatmul.mubr.f32.gmra.mxu0 %v256_v60  ;;  %1244 = vmatprep.subr.mxu0 %v1378_v44 }
 0x1a8   :  { %1248 = vmatprep.mubr.msk.f32.mxu0 %vm1379_vm2, %v1378_v44  ;;  %1245 = vmatpush3.msra.mxu0 %v576_v53 }
 0x1a9   :  { %1246 = vmatprep.subr.mxu0 %v1378_v44 }
 0x1aa   :  { %1247 = vmatpush3.msra.mxu0 %v575_v55 }
 0x1ab   :  { %1262 = vmatprep.subr.mxu0 %v1378_v44 }
 0x263   :  { %v1194_v9 = vpop.f32.mrf.mxu0 }
 0x264   :  { %v350_v12 = vadd.f32 %v1194_v9, %v1020_v10  ;;  %v734_v9 = vld [vmem:[#allocation2 + $0x1a8] sm:$0xff] }
 0x265   :  { %v344_v11 = vpop.f32.mrf.mxu0 }
 0x266   :  { %v345_v13 = vadd.f32 %v1020_v10, %v344_v11  ;;  %v827_v11 = vld [vmem:[#allocation2 + $0x218] sm:$0xff] }
 0x267   :  { %v1197_v14 = vpop.f32.mrf.mxu0 }
 0x268   :  { %v363_v15 = vmax.f32 %v345_v13, %v350_v12  ;;  %v360_v18 = vadd.f32 %v1197_v14, %v1020_v10  ;;  %v826_v12 = vld [vmem:[#allocation2 + $0x210] sm:$0xff]  ;;  %v825_v13 = vld [vmem:[#allocation2 + $0x208] sm:$0xff]  ;;  %v824_v14 = vld [vmem:[#allocation2 + $0x200] sm:$0xff] }
 0x269   :  { %v354_v16 = vpop.f32.mrf.mxu0 }
 0x26a   :  { %v364_v17 = vrot.slane %v363_v15, 4  ;;  %v355_v19 = vadd.f32 %v1020_v10, %v354_v16  ;;  %v733_v10 = vld [vmem:[#allocation2 + $0x1a0] sm:$0xff] }
 0x26c   :  { %v365_v20 = vmax.f32 %v363_v15, %v364_v17  ;;  %v370_v21 = vmax.f32 %v355_v19, %v360_v18  ;;  %v823_v15 = vld [vmem:[#allocation2 + $0x1f8] sm:$0xff]  ;;  %v1026_v19 = vld [vmem:[%s1527_s2 + $0x5] ss:$0 sm:$0xff] }
 0x26e   :  { %v366_v22 = vrot.slane %v365_v20, 2  ;;  %v371_v23 = vrot.slane %v370_v21, 4 }
 0x270   :  { %v367_v24 = vmax.f32 %v365_v20, %v366_v22  ;;  %v372_v25 = vmax.f32 %v370_v21, %v371_v23 }
 0x272   :  { %v373_v26 = vrot.slane %v372_v25, 2  ;;  %v368_v27 = vrot.slane %v367_v24, 1 }
 0x274   :  { %v374_v28 = vmax.f32 %v372_v25, %v373_v26  ;;  %v369_v30 = vmax.f32 %v367_v24, %v368_v27  ;;  %v822_v24 = vld [vmem:[#allocation2 + $0x1f0] sm:$0xff]  ;;  %v821_v25 = vld [vmem:[#allocation2 + $0x1e8] sm:$0xff]  ;;  %v820_v26 = vld [vmem:[#allocation2 + $0x1e0] sm:$0xff] }
 0x275   :  { %v914_v27 = vld [vmem:[#allocation2 + $0x258] sm:$0xff] }
 0x276   :  { %v375_v29 = vrot.slane %v374_v28, 1 }
 0x278   :  { %v376_v31 = vmax.f32 %v374_v28, %v375_v29  ;;  %v913_v28 = vld [vmem:[#allocation2 + $0x250] sm:$0xff]  ;;  %v912_v29 = vld [vmem:[#allocation2 + $0x248] sm:$0xff] }
 0x27a   :  { %v401_v33 = vsel %vm400_vm3, %v376_v31, %v369_v30  ;;  %v911_v30 = vld [vmem:[#allocation2 + $0x240] sm:$0xff]  ;;  %v910_v31 = vld [vmem:[#allocation2 + $0x238] sm:$0xff] }
 0x27b   :  { %1231 = vmatmul.mubr.f32.vlgmr.msra.gmra.mxu1 %v401_v33 }
 0x27c   :  { %1234 = vmatpush3.msra.mxu1 %v484_v32  ;;  %1237 = vmatprep.mubr.msk.f32.mxu1 %vm1379_vm2, %v1378_v44  ;;  %v1027_v32 = vld [vmem:[%s1527_s2 + $0x6] ss:$0 sm:$0xff] }
 0x27d   :  { %1235 = vmatprep.subr.mxu1 %v1378_v44 }
 0x27e   :  { %1236 = vmatpush3.msra.mxu1 %v483_v34 }
 0x27f   :  { %1238 = vmatmul.mubr.msk.f32.vlgmr.msra.gmra.mxu1 %vm40_vm0, %v482_v35  ;;  %1251 = vmatprep.subr.mxu1 %v1378_v44 }
 0x280   :  { %1259 = vmatprep.mubr.msk.f32.mxu1 %vm1379_vm2, %v1378_v44  ;;  %1252 = vmatpush3.msra.mxu1 %v574_v54 }
 0x281   :  { %1253 = vmatprep.subr.mxu1 %v1378_v44 }
 0x282   :  { %1254 = vmatpush3.msra.mxu1 %v573_v56 }
 0x283   :  { %1255 = vmatprep.subr.mxu1 %v1378_v44 }
 0x284   :  { %1256 = vmatpush3.msra.mxu1 %v572_v57 }
 0x285   :  { %1257 = vmatprep.subr.mxu1 %v1378_v44 }
 0x286   :  { %1258 = vmatpush3.msra.mxu1 %v571_v58 }
 0x287   :  { %1281 = vmatprep.subr.mxu1 %v1378_v44 }
 0x33b   :  { %v469_v37 = vpop.f32.mrf.mxu1 }
 0x33c   :  { %v470_v38 = vadd.f32 %v1021_v36, %v469_v37  ;;  %v909_v37 = vld [vmem:[#allocation2 + $0x230] sm:$0xff] }
 0x33d   :  { %v1232_v39 = vpop.f32.mrf.mxu1 }
 0x33e   :  { %v473_v41 = vmax.f32 %v470_v38, 0.0  ;;  %v908_v38 = vld [vmem:[#allocation2 + $0x228] sm:$0xff]  ;;  %v907_v39 = vld [vmem:[#allocation2 + $0x220] sm:$0xff] }
 0x33f   :  { %v559_v42 = vpop.f32.mrf.mxu1 }
 0x340   :  { %v560_v43 = vadd.f32 %v1022_v40, %v559_v42  ;;  %v474_v45 = vmul.f32 %v473_v41, %v473_v41  ;;  %v1029_v40 = vld [vmem:[%s1527_s2 + $0x7] ss:$0 sm:$0xff] }
 0x341   :  { %v1239_v46 = vpop.f32.mrf.mxu1 }
 0x342   :  { %v563_v47 = vmax.f32 %v560_v43, 0.0  ;;  %v476_v48 = vsel %vm475_vm4, %v474_v45, 0.0  ;;  %v1031_v46 = vld [vmem:[%s1527_s2 + $0x8] ss:$0 sm:$0xff] }
 0x343   :  { %477 = vadd.xlane.f32.xlu0 %v476_v48 }
 0x344   :  { %v564_v49 = vmul.f32 %v563_v47, %v563_v47 }
 0x346   :  { %v565_v50 = vsel %vm475_vm4, %v564_v49, 0.0 }
 0x347   :  { %566 = vadd.xlane.f32.xlu0 %v565_v50 }
 0x3cc   :  { %v478_v59 = vpop.xlane.xlu0 %477 }
 0x3cd   :  { %v479_v60 = vmax.f32 %v478_v59, 1e-24 }
 0x3cf   :  { %1325 = vrsqrt.f32 %v479_v60 }
 0x3d0   :  { %v567_v61 = vpop.xlane.xlu0 %566 }
 0x3d1   :  { %v568_v62 = vmax.f32 %v567_v61, 1e-24 }
 0x3d3   :  { %1327 = vrsqrt.f32 %v568_v62 }
 0x3dc   :  { %v1326_v63 = vpop.eup %1325 }
 0x3dd   :  { %v481_v0 = vmul.f32 %v1326_v63, %v473_v41 }
 0x3df   :  { %1249 = vmatmul.mubr.msk.f32.vlgmr.msra.gmra.mxu0 %vm579_vm5, %v481_v0 }
 0x3e0   :  { %v1328_v3 = vpop.eup %1327  ;;  %1263 = vmatpush3.msra.mxu0 %v740_v1  ;;  %1278 = vmatprep.mubr.msk.f32.mxu0 %vm1379_vm2, %v1378_v44 }
 0x3e1   :  { %v570_v4 = vmul.f32 %v1328_v3, %v563_v47  ;;  %1264 = vmatprep.subr.mxu0 %v1378_v44 }
 0x3e2   :  { %1265 = vmatpush3.msra.mxu0 %v739_v2 }
 0x3e3   :  { %1260 = vmatmul.mubr.msk.f32.vlgmr.msra.gmra.mxu1 %vm579_vm5, %v570_v4  ;;  %1266 = vmatprep.subr.mxu0 %v1378_v44 }
 0x3e4   :  { %1297 = vmatprep.mubr.msk.f32.mxu1 %vm1379_vm2, %v1378_v44  ;;  %1267 = vmatpush3.msra.mxu0 %v738_v5 }
 0x3e5   :  { %1268 = vmatprep.subr.mxu0 %v1378_v44  ;;  %1282 = vmatpush3.msra.mxu1 %v827_v11 }
 0x3e6   :  { %1269 = vmatpush3.msra.mxu0 %v737_v6  ;;  %1283 = vmatprep.subr.mxu1 %v1378_v44 }
 0x3e7   :  { %1270 = vmatprep.subr.mxu0 %v1378_v44  ;;  %1284 = vmatpush3.msra.mxu1 %v826_v12 }
 0x3e8   :  { %1271 = vmatpush3.msra.mxu0 %v736_v7  ;;  %1285 = vmatprep.subr.mxu1 %v1378_v44 }
 0x3e9   :  { %1272 = vmatprep.subr.mxu0 %v1378_v44  ;;  %1286 = vmatpush3.msra.mxu1 %v825_v13 }
 0x3ea   :  { %1273 = vmatpush3.msra.mxu0 %v735_v8  ;;  %1287 = vmatprep.subr.mxu1 %v1378_v44 }
 0x3eb   :  { %1274 = vmatprep.subr.mxu0 %v1378_v44  ;;  %1288 = vmatpush3.msra.mxu1 %v824_v14 }
 0x3ec   :  { %1275 = vmatpush3.msra.mxu0 %v734_v9  ;;  %1289 = vmatprep.subr.mxu1 %v1378_v44 }
 0x3ed   :  { %1276 = vmatprep.subr.mxu0 %v1378_v44  ;;  %1290 = vmatpush3.msra.mxu1 %v823_v15 }
 0x3ee   :  { %1277 = vmatpush3.msra.mxu0 %v733_v10  ;;  %1291 = vmatprep.subr.mxu1 %v1378_v44 }
 0x3ef   :  { %1300 = vmatprep.subr.mxu0 %v1378_v44  ;;  %1292 = vmatpush3.msra.mxu1 %v822_v24 }
 0x3f0   :  { %1293 = vmatprep.subr.mxu1 %v1378_v44 }
 0x3f1   :  { %1294 = vmatpush3.msra.mxu1 %v821_v25 }
 0x3f2   :  { %1295 = vmatprep.subr.mxu1 %v1378_v44 }
 0x3f3   :  { %1296 = vmatpush3.msra.mxu1 %v820_v26 }
 0x49f   :  { %v649_v16 = vpop.f32.mrf.mxu0 }
 0x4a1   :  { %v1250_v17 = vpop.f32.mrf.mxu0 }
 0x4a3   :  { %v722_v18 = vpop.f32.mrf.mxu1 }
 0x4a4   :  { %v723_v20 = vadd.f32 %v722_v18, %v649_v16 }
 0x4a5   :  { %v1261_v21 = vpop.f32.mrf.mxu1 }
 0x4a6   :  { %v731_v22 = vadd.f32 %v1026_v19, %v723_v20 }
 0x4a8   :  { %v732_v23 = vmax.f32 %v731_v22, 0.0 }
 0x4aa   :  { %1279 = vmatmul.mubr.msk.f32.vlgmr.msra.gmra.mxu0 %vm155_vm1, %v732_v23 }
 0x4ab   :  { %1316 = vmatprep.mubr.msk.f32.mxu0 %vm1379_vm2, %v1378_v44  ;;  %1301 = vmatpush3.msra.mxu0 %v914_v27 }
 0x4ac   :  { %1302 = vmatprep.subr.mxu0 %v1378_v44 }
 0x4ad   :  { %1303 = vmatpush3.msra.mxu0 %v913_v28 }
 0x4ae   :  { %1304 = vmatprep.subr.mxu0 %v1378_v44 }
 0x4af   :  { %1305 = vmatpush3.msra.mxu0 %v912_v29 }
 0x4b0   :  { %1306 = vmatprep.subr.mxu0 %v1378_v44 }
 0x4b1   :  { %1307 = vmatpush3.msra.mxu0 %v911_v30 }
 0x4b2   :  { %1308 = vmatprep.subr.mxu0 %v1378_v44 }
 0x4b3   :  { %1309 = vmatpush3.msra.mxu0 %v910_v31 }
 0x4b4   :  { %1310 = vmatprep.subr.mxu0 %v1378_v44 }
 0x4b5   :  { %1311 = vmatpush3.msra.mxu0 %v909_v37 }
 0x4b6   :  { %1312 = vmatprep.subr.mxu0 %v1378_v44 }
 0x4b7   :  { %1313 = vmatpush3.msra.mxu0 %v908_v38 }
 0x4b8   :  { %1314 = vmatprep.subr.mxu0 %v1378_v44 }
 0x4b9   :  { %1315 = vmatpush3.msra.mxu0 %v907_v39 }
 0x56a   :  { %v815_v33 = vpop.f32.mrf.mxu0 }
 0x56b   :  { %v816_v34 = vadd.f32 %v1027_v32, %v815_v33 }
 0x56c   :  { %v1280_v35 = vpop.f32.mrf.mxu0 }
 0x56d   :  { %v819_v36 = vmax.f32 %v816_v34, 0.0 }
 0x56f   :  { %1298 = vmatmul.mubr.msk.f32.vlgmr.msra.gmra.mxu1 %vm155_vm1, %v819_v36 }
 0x62f   :  { %v902_v41 = vpop.f32.mrf.mxu1 }
 0x630   :  { %v903_v42 = vadd.f32 %v1029_v40, %v902_v41 }
 0x631   :  { %v1299_v43 = vpop.f32.mrf.mxu1 }
 0x632   :  { %v906_v45 = vmax.f32 %v903_v42, 0.0 }
 0x634   :  { %1317 = vmatmul.mubr.msk.f32.vlgmr.msra.gmra.mxu0 %vm155_vm1, %v906_v45 }
 0x6f4   :  { %v989_v47 = vpop.f32.mrf.mxu0 }
 0x6f5   :  { %v990_v48 = vadd.f32 %v1031_v46, %v989_v47 }
 0x6f6   :  { %v1318_v49 = vpop.f32.mrf.mxu0 }
 0x6f7   :  { %1329 = vtanh.f32 %v990_v48 }
 0x704   :  { %v1330_v44 = vpop.eup %1329 }
 0x705   :  { %994 = vst [vmem:[#allocation5] sm:$0x3] %v1330_v44 }
 0x706   :  { %1362 = shalt.err (!%p1359_p9)
}
 0x707   :  { %1004 = dma.vmem_to_hbm [thread:$0]  %s1002_s19, 32, %s1528_s3, [#allocation4]  }
 0x708   :  { %1373 = dma.done.wait [#allocation4], 32  }
 0x709   :  { %1374 = vsyncadd [#allocation4], 4294967264 }
 0x70a   :  { %1008 = vsyncpa [#allocation3], 1 }
 0x70b   :  { %1009 = vsyncpa [#allocation4], 1 }

</bundles_post_ra>
